<compile_context>
chip_gen: v7x
topology: tpu7x:2x2x1
jax: 0.10.0
libtpu: 0.0.40
codegen_flags: <defaults>
</compile_context>

<pallas_src>
import functools

import jax
import jax.numpy as jnp
from jax import lax
from jax.experimental import pallas as pl
from jax.experimental.pallas import tpu as pltpu


def _adaln_kernel(x_ref, ss_ref, o_ref, *, eps):
    """Grid = (B, num_l_tiles).

    x_ref  : (1, TL, D)  row tile of one batch element's sequence
    ss_ref : (1, 2, D)   f32 [shift; scale_bias + scale] for this batch elem
    o_ref  : (1, TL, D)  output tile
    """
    x = x_ref[0].astype(jnp.float32)                     # (TL, D) f32 compute
    ss = ss_ref[0]                                       # (2, D) f32
    mean = jnp.mean(x, axis=-1, keepdims=True)
    xc = x - mean
    var = jnp.mean(xc * xc, axis=-1, keepdims=True)      # biased var (torch LN)
    out = xc * lax.rsqrt(var + eps) * ss[1:2, :] + ss[0:1, :]   # (TL, D)
    o_ref[0] = out.astype(o_ref.dtype)


def _sublane_pack(itemsize):
    # f32 -> 8 rows, bf16 -> 16, int8/fp8 -> 32 (sub-32-bit packs along sublanes).
    return max(8, 32 // max(1, itemsize))


def _pick_tl(L, D, itemsize, phys_vmem):
    """Tile rows sized by a byte target with explicit f32-temp accounting."""
    pack = _sublane_pack(itemsize)
    row_io = 4 * D * itemsize          # 2x double-buffered input + 2x output
    row_tmp = 3 * D * 4                # ~3 live (TL, D) f32 temporaries (x, xc, out)
    bytes_per_row = row_io + row_tmp
    # Keep the working set well inside VMEM on every generation (v7x = 64 MiB/TC).
    budget = min((phys_vmem * 3) // 4, 48 << 20)
    max_rows_vmem = max(1, budget // bytes_per_row)
    # Beyond ~8 MiB of x per tile the kernel is already at the HBM roofline;
    # bigger tiles only add VMEM pressure.
    max_rows_xtile = max(1, (8 << 20) // max(1, D * itemsize))
    tl = min(L, max_rows_vmem, max_rows_xtile)
    if tl >= L:
        return L                       # block dim == full array dim: always legal
    if tl >= pack:
        return (tl // pack) * pack     # sublane-aligned -> unmasked vld/vst
    return min(pack, L)


def adaptive_layer_norm(x, c, w, b, *, scale_bias=0.0, eps=1e-5, tl=None):
    """x: (B, L, D); c: (B, C_ctx); w: (C_ctx, 2*D); b: (2*D,)."""
    B, L, D = x.shape
    itemsize = jnp.dtype(x.dtype).itemsize

    # --- modulation hoisted out of the kernel (single XLA matmul for all B) --
    cf = c.astype(jnp.float32)
    h = cf * jax.nn.sigmoid(cf)                                   # SiLU
    mod = h @ w.astype(jnp.float32) + b.astype(jnp.float32)       # (B, 2D)
    shift = mod[:, :D]
    scale = jnp.float32(scale_bias) + mod[:, D:]
    ss = jnp.stack([shift, scale], axis=1)                        # (B, 2, D) f32

    # --- generation-aware tile sizing (v7x: 64 MiB VMEM; v5e/v6e: 128 MiB) ---
    try:
        phys_vmem = int(pltpu.get_tpu_info().vmem_capacity_bytes)
    except Exception:
        phys_vmem = 64 << 20  # conservative (v7x-sized) fallback

    if tl is None:
        tl = _pick_tl(L, D, itemsize, phys_vmem)
    tl = int(min(tl, L))
    num_l_tiles = pl.cdiv(L, tl)

    # v7x has 2 TensorCores: make sure there are >= 2 parallel tiles when the
    # problem allows it, otherwise one core idles.
    pack = _sublane_pack(itemsize)
    if B * num_l_tiles < 2 and L >= 2 * pack:
        half = pl.cdiv(L, 2)
        tl = max(pack, ((half + pack - 1) // pack) * pack)
        num_l_tiles = pl.cdiv(L, tl)

    grid = (B, num_l_tiles)

    # Scoped-VMEM limit tracking the real working set (default scoped limit is
    # only 16-32 MiB), capped below physical capacity.
    working = (4 * tl * D * itemsize     # double-buffered x in + out tiles
               + 3 * tl * D * 4          # in-kernel f32 temporaries
               + 2 * 2 * D * 4)          # double-buffered (2, D) shift/scale
    vmem_limit = int(min(max(working * 3 // 2, 32 << 20), phys_vmem * 9 // 10))

    kernel = functools.partial(_adaln_kernel, eps=float(eps))

    # NOTE: for real model shapes D should be a multiple of 128 so output
    # stores stay lane-dense (unmasked vst); smaller D is still correct since
    # the block's last dim equals the full array dim.
    out = pl.pallas_call(
        kernel,
        out_shape=jax.ShapeDtypeStruct((B, L, D), x.dtype),
        grid_spec=pltpu.PrefetchScalarGridSpec(
            num_scalar_prefetch=0,
            grid=grid,
            in_specs=[
                pl.BlockSpec((1, tl, D), lambda bi, j: (bi, j, 0)),   # x rows
                pl.BlockSpec((1, 2, D), lambda bi, j: (bi, 0, 0)),    # [shift; scale]
            ],
            out_specs=pl.BlockSpec((1, tl, D), lambda bi, j: (bi, j, 0)),
        ),
        compiler_params=pltpu.CompilerParams(
            dimension_semantics=("parallel", "parallel"),   # megacore sharding
            vmem_limit_bytes=vmem_limit,
        ),
    )(x, ss)
    return out


def _reference(x, c, w, b, scale_bias, eps=1e-5):
    h = c * jax.nn.sigmoid(c)
    mod = h @ w + b                       # (B, 2D)
    D = x.shape[-1]
    shift, scale = mod[:, None, :D], mod[:, None, D:]
    mean = jnp.mean(x, axis=-1, keepdims=True)
    var = jnp.mean((x - mean) ** 2, axis=-1, keepdims=True)
    xn = (x - mean) / jnp.sqrt(var + eps)
    return xn * (scale_bias + scale) + shift


if __name__ == "__main__":
    # Small smoke-test shapes (real model D should be a multiple of 128).
    B, L, D, C_CTX = 2, 8, 32, 16
    SCALE_BIAS = 1.0

    key = jax.random.PRNGKey(0)
    kx, kc, kw, kb = jax.random.split(key, 4)
    x = jax.random.normal(kx, (B, L, D), dtype=jnp.float32)
    c = jax.random.normal(kc, (B, C_CTX), dtype=jnp.float32)
    # Deterministic, non-zero params (the module's init zeroes them; see note).
    w = 0.02 * jax.random.normal(kw, (C_CTX, 2 * D), dtype=jnp.float32)
    b = 0.01 * jax.random.normal(kb, (2 * D,), dtype=jnp.float32)

    out = adaptive_layer_norm(x, c, w, b, scale_bias=SCALE_BIAS)
    out = jax.block_until_ready(out)

    ref = _reference(x, c, w, b, SCALE_BIAS)
    assert out.shape == (B, L, D)
    assert jnp.allclose(out, ref, atol=1e-5, rtol=1e-5), "mismatch vs reference"

    print("KERNEL_OK")
</pallas_src>

<mosaic_0001>
module attributes {stable_mosaic.version = 11 : i64} {
  func.func @_adaln_kernel(%arg0: i32, %arg1: i32, %arg2: memref<1x8x32xf32, #tpu.memory_space<vmem>>, %arg3: memref<1x2x32xf32, #tpu.memory_space<vmem>>, %arg4: memref<1x8x32xf32, #tpu.memory_space<vmem>>) attributes {dimension_semantics = [#tpu.dimension_semantics<parallel>, #tpu.dimension_semantics<parallel>], iteration_bounds = array<i64: 2, 1>, scalar_prefetch = 0 : i64, scratch_operands = 0 : i64, tpu.core_type = #tpu.core_type<tc>, window_params = [{transform_indices = @transform_0, window_bounds = array<i64: 1, 8, 32>}, {transform_indices = @transform_1, window_bounds = array<i64: 1, 2, 32>}, {transform_indices = @transform_2, window_bounds = array<i64: 1, 8, 32>}]} {
    %c0 = arith.constant 0 : index
    %c0_0 = arith.constant 0 : index
    %c0_1 = arith.constant 0 : index
    %0 = vector.load %arg2[%c0, %c0_0, %c0_1] : memref<1x8x32xf32, #tpu.memory_space<vmem>>, vector<1x8x32xf32>
    %1 = vector.shape_cast %0 : vector<1x8x32xf32> to vector<8x32xf32>
    %c0_2 = arith.constant 0 : index
    %c0_3 = arith.constant 0 : index
    %c0_4 = arith.constant 0 : index
    %2 = vector.load %arg3[%c0_2, %c0_3, %c0_4] : memref<1x2x32xf32, #tpu.memory_space<vmem>>, vector<1x2x32xf32>
    %3 = vector.shape_cast %2 : vector<1x2x32xf32> to vector<2x32xf32>
    %cst = arith.constant dense<0.000000e+00> : vector<8xf32>
    %4 = vector.multi_reduction <add>, %1, %cst [1] : vector<8x32xf32> to vector<8xf32>
    %5 = vector.shape_cast %4 : vector<8xf32> to vector<8x1xf32>
    %cst_5 = arith.constant 3.200000e+01 : f32
    %6 = vector.broadcast %cst_5 : f32 to vector<8x1xf32>
    %7 = arith.divf %5, %6 : vector<8x1xf32>
    %8 = vector.broadcast %7 : vector<8x1xf32> to vector<8x32xf32>
    %9 = arith.subf %1, %8 : vector<8x32xf32>
    %10 = arith.mulf %9, %9 : vector<8x32xf32>
    %cst_6 = arith.constant dense<0.000000e+00> : vector<8xf32>
    %11 = vector.multi_reduction <add>, %10, %cst_6 [1] : vector<8x32xf32> to vector<8xf32>
    %12 = vector.shape_cast %11 : vector<8xf32> to vector<8x1xf32>
    %cst_7 = arith.constant 3.200000e+01 : f32
    %13 = vector.broadcast %cst_7 : f32 to vector<8x1xf32>
    %14 = arith.divf %12, %13 : vector<8x1xf32>
    %cst_8 = arith.constant 9.99999974E-6 : f32
    %15 = vector.broadcast %cst_8 : f32 to vector<8x1xf32>
    %16 = arith.addf %14, %15 : vector<8x1xf32>
    %17 = math.rsqrt %16 : vector<8x1xf32>
    %18 = vector.broadcast %17 : vector<8x1xf32> to vector<8x32xf32>
    %19 = arith.mulf %9, %18 : vector<8x32xf32>
    %20 = vector.extract_strided_slice %3 {offsets = [1, 0], sizes = [1, 32], strides = [1, 1]} : vector<2x32xf32> to vector<1x32xf32>
    %21 = vector.broadcast %20 : vector<1x32xf32> to vector<8x32xf32>
    %22 = arith.mulf %19, %21 : vector<8x32xf32>
    %23 = vector.extract_strided_slice %3 {offsets = [0, 0], sizes = [1, 32], strides = [1, 1]} : vector<2x32xf32> to vector<1x32xf32>
    %24 = vector.broadcast %23 : vector<1x32xf32> to vector<8x32xf32>
    %25 = arith.addf %22, %24 : vector<8x32xf32>
    %c0_9 = arith.constant 0 : index
    %c0_10 = arith.constant 0 : index
    %c0_11 = arith.constant 0 : index
    %26 = vector.load %arg4[%c0_9, %c0_10, %c0_11] : memref<1x8x32xf32, #tpu.memory_space<vmem>>, vector<1x8x32xf32>
    %27 = vector.shape_cast %26 : vector<1x8x32xf32> to vector<8x32xf32>
    %28 = vector.shape_cast %25 : vector<8x32xf32> to vector<1x8x32xf32>
    tpu.vector_store %arg4[%c0_9, %c0_10, %c0_11], %28 {strides = array<i32>} : memref<1x8x32xf32, #tpu.memory_space<vmem>>, vector<1x8x32xf32>,
    return
  }
  func.func @transform_0(%arg0: i32, %arg1: i32) -> (i32, i32, i32) {
    %c0_i32 = arith.constant 0 : i32
    %c0_i32_0 = arith.constant 0 : i32
    return %arg0, %arg1, %c0_i32 : i32, i32, i32
  }
  func.func @transform_1(%arg0: i32, %arg1: i32) -> (i32, i32, i32) {
    %c0_i32 = arith.constant 0 : i32
    %c0_i32_0 = arith.constant 0 : i32
    %c0_i32_1 = arith.constant 0 : i32
    return %arg0, %c0_i32, %c0_i32_0 : i32, i32, i32
  }
  func.func @transform_2(%arg0: i32, %arg1: i32) -> (i32, i32, i32) {
    %c0_i32 = arith.constant 0 : i32
    %c0_i32_0 = arith.constant 0 : i32
    return %arg0, %arg1, %c0_i32 : i32, i32, i32
  }
}

</mosaic_0001>

<bundles_post_ra>
// kernel: tpu_custom_call.1
= control target key start
LH: loop header
LB: loop body
LE: loop exit
PB: predicated region body
PF: predicated region fallthrough
CT: control target
= control target key end

     0   :  { %7 = vsyncpa [#allocation3], 0  ;;  %s832_s0 = inlined_call_operand.hbm [shape: f32[2,8,32], index: 0, kind: input, shape index: {}]   ;;  %s833_s1 = inlined_call_operand.hbm [shape: f32[2,2,32], index: 1, kind: input, shape index: {}]   ;;  %s834_s2 = inlined_call_operand.hbm [shape: f32[2,8,32], index: 2, kind: output, shape index: {}]  }
   0x1   :  { %9 = vsyncpa [#allocation3 + $0x1], 0 }
   0x2   :  { %10 = vsyncpa [#allocation6], 0 }
   0x3   :  { %12 = vsyncpa [#allocation6 + $0x1], 0 }
   0x4   :  { %13 = vsyncpa [#allocation4], 0 }
   0x5   :  { %15 = vsyncpa [#allocation4 + $0x1], 0  ;;  %s610_s9 = smov 0   ;;  %s612_s10 = smov 0  }
   0x6   :  { %s614_s11 = smov 0   ;;  %s616_s12 = smov 0  }
   0x7   :  { %s618_s13 = smov 0   ;;  %s620_s14 = smov 0  }
   0x8 LB: > { %s359_s15 = sadd.s32 4294967295, %s590_s14   ;;  %s360_s16 = sadd.s32 4294967294, %s590_s14   ;;  %s590_s14 = sphi %s620_s14, %s21_s14   ;;  %s586_s13 = sphi %s618_s13, %s854_s13   ;;  %s582_s12 = sphi %s616_s12, %s853_s12   ;;  %s578_s11 = sphi %s614_s11, %s852_s11   ;;  %s574_s10 = sphi %s612_s10, %s851_s10   ;;  %s570_s9 = sphi %s610_s9, %s850_s9  }
   0x9   : > { %s33_s17 = sadd.s32 1, %s586_s13  ;;  %s42_s18 = sadd.s32 1, %s578_s11 }
   0xa   : > { %p35_p0 = scmp.ge.s32.totalorder %s33_s17, 2  ;;  %p49_p1 = scmp.ne.s32.totalorder %s578_s11, %s574_s10 }
   0xb   : > { %p50_p2 = scmp.eq.s32.totalorder %s590_s14, 0  ;;  %p55_p3 = scmp.ne.s32.totalorder %s574_s10, %s570_s9 }
   0xc   : > { %s856_s17 = smov (%p35_p0, %s33_s17), 0  ;;  %p56_p5 = scmp.eq.s32.totalorder %s359_s15, 0 }
   0xd   : > { %p651_p4 = por %p50_p2, %p49_p1  ;;  %s37_s20 = ssub.s32 %s586_s13, %s856_s17 }
   0xe   : > { %p107_p6 = scmp.eq.s32.totalorder %s359_s15, 1  ;;  %p40_p7 = scmp.eq.s32.totalorder %s37_s20, 0 }
   0xf   : > { %p657_p8 = por %p56_p5, %p55_p3  ;;  %p113_p10 = scmp.eq.s32.totalorder %s360_s16, 1 }
  0x10   : > { %p661_p9 = por %p107_p6, %p49_p1  ;;  %p392_p13 = scmp.lt.s32.totalorder %s590_s14, 2 }
  0x11   : > { %s838_s21 = scalar_select %p657_p8, 1, 0 }
  0x12   : > { %s839_s22 = scalar_select %p661_p9, 1, 0 }
  0x13   : > { %s666_s23 = scalar_select %p40_p7, %s578_s11, %s42_s18  }
  0x14   : > { %p668_p11 = por %p113_p10, %p55_p3  ;;  %s675_s25 = sand.u32 1, %s578_s11  }
  0x15   : > { %s363_s26 = sshll.u32 %s675_s25, 3  ;;  %s364_s27 = sshll.u32 %s586_s13, 7 }
  0x16   : > { %s840_s24 = scalar_select %p668_p11, 1, 0 }
  0x17   : > { %s682_s30 = scalar_lea.hbm %s832_s0, %s364_s27  ;;  %s137_s3 = scalar_lea.vmem [#allocation2], %s363_s26 }
  0x18   : > { %s145_s4 = sshll.u32 %s137_s3, 4  ;;  %p688_p0 = pnand %p392_p13, %p651_p4  ;;  %s684_s4 = int_to_ptr.vmem [resolvable:$true] %s145_s4 }
  0x19   : > { %s134_s6 = scalar_lea.sflag [#allocation3], %s675_s25  ;;  %s444_s7 = scalar_lea.hbm %s682_s30, 128 }
  0x1a   : > { %p445_p3 = scmp.ne.s32.totalorder %s682_s30, %s444_s7  ;;  %p446_p5 = pneg %p688_p0 }
  0x1b   : > { %s449_s16 = scalar_lea.hbm %s832_s0, 256  ;;  %p450_p4 = scmp.lt.u32.totalorder %s682_s30, %s832_s0 }
  0x1c   : > { %p447_p6 = pnand %p446_p5, %p445_p3  ;;  %p451_p10 = scmp.lt.u32.totalorder %s449_s16, %s444_s7 }
  0x1d   : > { %p453_p12 = scmp.lt.u32.totalorder %s444_s7, %s682_s30 }
  0x1e   : > { %p448_p7 = pneg %p447_p6  ;;  %p452_p13 = por %p451_p10, %p450_p4 }
  0x20   : > { %p454_p1 = por %p453_p12, %p452_p13 }
  0x22   : > { %p455_p2 = pnand %p454_p1, %p448_p7 }
  0x24   : > { %458 = shalt.err (!%p455_p2)
}
  0x25   : > { %s459_s20 = scalar_lea.vmem %s684_s4, 128  ;;  %s592_s26 = smov [#allocation2]  }
  0x26   : > { %p460_p3 = scmp.ne.s32.totalorder %s684_s4, %s459_s20  ;;  %s464_s27 = sshll.u32 %s592_s26, 4  ;;  %s465_s27 = int_to_ptr.vmem [resolvable:$false] %s464_s27 }
  0x27   : > { %s466_s28 = scalar_lea.vmem %s465_s27, 256  ;;  %p467_p9 = scmp.lt.s32.totalorder %s684_s4, %s465_s27 }
  0x28   : > { %p462_p6 = pnand %p460_p3, %p446_p5  ;;  %p468_p4 = scmp.lt.s32.totalorder %s466_s28, %s459_s20 }
  0x2a   : > { %p463_p11 = pneg %p462_p6  ;;  %p469_p10 = por %p468_p4, %p467_p9 }
  0x2c   : > { %p470_p12 = pnand %p469_p10, %p463_p11 }
  0x2e   : > { %473 = shalt.err (!%p470_p12)
}
  0x2f   : > { %384 = dma.hbm_to_vmem [thread:$0]  (!%p688_p0), %s682_s30, 128, %s684_s4, %s134_s6  }
  0x30   : > { %p842_p1 = scmp.lt.s32.totalorder %s590_s14, 3  ;;  %p843_p2 = scmp.ge.s32.totalorder %s590_s14, 1 }
  0x31   : > { %s365_s3 = sshll.u32 %s675_s25, 1  ;;  %s366_s7 = sshll.u32 %s586_s13, 5 }
  0x32   : > { %p724_p7 = pnand %p843_p2, %p842_p1  ;;  %s733_s16 = scalar_lea.hbm %s833_s1, %s366_s7 }
  0x33   : > { %s156_s18 = scalar_lea.vmem [#allocation5], %s365_s3  ;;  %s153_s30 = scalar_lea.sflag [#allocation6], %s675_s25 }
  0x34   : > { %s844_s29 = scalar_select %p724_p7, 1, 0 }
  0x35   : > { %s163_s19 = sshll.u32 %s156_s18, 4  ;;  %s474_s4 = scalar_lea.hbm %s733_s16, 32  ;;  %s164_s19 = int_to_ptr.vmem [resolvable:$true] %s163_s19 }
  0x36   : > { %p475_p9 = scmp.ne.s32.totalorder %s733_s16, %s474_s4  ;;  %s479_s26 = scalar_lea.hbm %s833_s1, 64 }
  0x37   : > { %p480_p3 = scmp.lt.u32.totalorder %s733_s16, %s833_s1  ;;  %p481_p6 = scmp.lt.u32.totalorder %s479_s26, %s474_s4 }
  0x38   : > { %p477_p11 = pnand %p475_p9, %p446_p5  ;;  %p483_p10 = scmp.lt.u32.totalorder %s474_s4, %s733_s16 }
  0x39   : > { %p482_p4 = por %p481_p6, %p480_p3 }
  0x3a   : > { %p478_p13 = pneg %p477_p11 }
  0x3b   : > { %p484_p12 = por %p483_p10, %p482_p4 }
  0x3d   : > { %p485_p1 = pnand %p484_p12, %p478_p13 }
  0x3f   : > { %488 = shalt.err (!%p485_p1)
}
  0x40   : > { %s489_s25 = scalar_lea.vmem %s164_s19, 32  ;;  %s593_s3 = smov [#allocation5]  }
  0x41   : > { %p490_p2 = scmp.ne.s32.totalorder %s164_s19, %s489_s25  ;;  %s494_s7 = sshll.u32 %s593_s3, 4  ;;  %s495_s7 = int_to_ptr.vmem [resolvable:$false] %s494_s7 }
  0x42   : > { %s496_s8 = scalar_lea.vmem %s495_s7, 64  ;;  %p497_p8 = scmp.lt.s32.totalorder %s164_s19, %s495_s7 }
  0x43   : > { %p492_p9 = pnand %p490_p2, %p446_p5  ;;  %p498_p7 = scmp.lt.s32.totalorder %s496_s8, %s489_s25 }
  0x45   : > { %p493_p11 = pneg %p492_p9  ;;  %p499_p3 = por %p498_p7, %p497_p8 }
  0x47   : > { %p500_p6 = pnand %p499_p3, %p493_p11 }
  0x49   : > { %503 = shalt.err (!%p500_p6)
}
  0x4a   : > { %387 = dma.hbm_to_vmem [thread:$0]  (!%p688_p0), %s733_s16, 32, %s164_s19, %s153_s30  }
  0x4b   : > { %p845_p13 = scmp.ne.s32.totalorder %s844_s29, 0 }
  0x4c   : > { %s758_s15 = sand.u32 (!%p845_p13), 1, %s574_s10   ;;  %p846_p8 = scmp.ne.s32.totalorder (!%p845_p13), %s838_s21, 0 }
  0x4d   : > { %172 = sbr.rel (%p845_p13) target bundleno = 416 (0x1a0), region = 28  ;;  %s368_s18 = sshll.u32 (!%p845_p13), %s758_s15, 3 }
  0x4e   : > { %s175_s4 = scalar_lea.sflag (!%p845_p13), [#allocation3], %s758_s15  ;;  %s178_s6 = scalar_lea.vmem (!%p845_p13), [#allocation2], %s368_s18 }
  0x54   : > { %557 = dma.done.wait (%p846_p8), %s175_s4, 128  }
  0x55   : > { %559 = vsyncadd (%p846_p8), %s175_s4, 4294967168  ;;  %s369_s5 = sshll.u32 %s758_s15, 1  ;;  %s184_s29 = scalar_lea.sflag [#allocation6], %s758_s15 }
  0x56   : > { %s187_s16 = scalar_lea.vmem [#allocation5], %s369_s5 }
  0x57   : > { %561 = dma.done.wait (%p846_p8), %s184_s29, 32  }
  0x58   : > { %563 = vsyncadd (%p846_p8), %s184_s29, 4294967264  ;;  %vm215_vm0 = vcmask 261120   ;;  %v213_v0 = vld [vmem:[%s178_s6] sm:$0xff]  ;;  %v230_v9 = vlaneseq  ;;  %v214_v13 = vld [vmem:[%s187_s16] sm:$0x3]  ;;  %s372_s21 = sshll.u32 %s582_s12, 7 }
  0x59   : > { %v216_v1 = vsel %vm215_vm0, %v213_v0, 0.0  ;;  %s212_s19 = scalar_lea.vmem [#allocation7], %s368_s18  ;;  %s782_s27 = scalar_lea.hbm %s834_s2, %s372_s21 }
  0x5a   : > { %217 = vadd.xlane.f32.xlu0 %v216_v1  ;;  %v231_v11 = vshrl.u32 %v230_v9, 7  ;;  %s256_s30 = sshll.u32 %s212_s19, 4  ;;  %s242_s28 = scalar_lea.sflag [#allocation4], %s758_s15  ;;  %s784_s30 = int_to_ptr.vmem [resolvable:$true] %s256_s30 }
  0x5b   : > { %s504_s25 = scalar_lea.vmem %s784_s30, 128  ;;  %p847_p5 = scmp.ne.s32.totalorder %s839_s22, 0 }
  0x5c   : > { %v232_v12 = vsub.s32 1, %v231_v11  ;;  %v237_v14 = vsub.s32 0, %v231_v11  ;;  %p505_p0 = scmp.ne.s32.totalorder %s784_s30, %s504_s25  ;;  %s594_s12 = smov [#allocation7]  }
  0x5d   : > { %s508_s3 = sshll.u32 %s594_s12, 4  ;;  %s509_s3 = int_to_ptr.vmem [resolvable:$false] %s508_s3 }
  0x5e   : > { %v233_v15 = vrot.slane %v214_v13, %v232_v12  ;;  %v238_v18 = vrot.slane %v214_v13, %v237_v14  ;;  %p506_p7 = pnand %p505_p0, %p847_p5  ;;  %s510_s7 = scalar_lea.vmem %s509_s3, 256 }
  0x5f   : > { %p511_p10 = scmp.lt.s32.totalorder %s784_s30, %s509_s3  ;;  %p512_p12 = scmp.lt.s32.totalorder %s510_s7, %s504_s25 }
  0x60   : > { %p507_p4 = pneg %p506_p7 }
  0x61   : > { %p513_p1 = por %p512_p12, %p511_p10 }
  0x63   : > { %p514_p2 = pnand %p513_p1, %p507_p4 }
  0xe7   : > { %v218_v2 = vpop.xlane.xlu0 %217 }
  0xe8   : > { %v220_v3 = vmul.f32 0.03125, %v218_v2 }
  0xea   : > { %v221_v4 = vsub.f32 %v213_v0, %v220_v3 }
  0xec   : > { %v222_v5 = vmul.f32 %v221_v4, %v221_v4 }
  0xee   : > { %v223_v6 = vsel %vm215_vm0, %v222_v5, 0.0 }
  0xef   : > { %224 = vadd.xlane.f32.xlu0 %v223_v6 }
 0x17c   : > { %v225_v7 = vpop.xlane.xlu0 %224 }
 0x17d   : > { %v226_v8 = vmul.f32 0.03125, %v225_v7 }
 0x17f   : > { %v227_v10 = vadd.f32 1e-05, %v226_v8 }
 0x181   : > { %442 = vrsqrt.f32 %v227_v10 }
 0x18b   : > { %v443_v16 = vpop.eup %442 }
 0x18c   : > { %v229_v17 = vmul.f32 %v443_v16, %v221_v4 }
 0x18e   : > { %v234_v19 = vmul.f32 %v233_v15, %v229_v17 }
 0x190   : > { %v239_v20 = vadd.f32 %v238_v18, %v234_v19 }
 0x192   : > { %240 = vst.msk [vmem:[%s212_s19] sm:$0xff] %vm215_vm0, %v239_v20 }
 0x193   : > { %517 = shalt.err (!%p514_p2)
}
 0x194   : > { %s518_s8 = scalar_lea.hbm %s782_s27, 128  ;;  %s522_s4 = scalar_lea.hbm %s834_s2, 256 }
 0x195   : > { %p519_p9 = scmp.ne.s32.totalorder %s782_s27, %s518_s8  ;;  %p523_p6 = scmp.lt.u32.totalorder %s782_s27, %s834_s2 }
 0x196   : > { %p524_p13 = scmp.lt.u32.totalorder %s522_s4, %s518_s8  ;;  %p526_p0 = scmp.lt.u32.totalorder %s518_s8, %s782_s27 }
 0x197   : > { %p520_p11 = pnand %p519_p9, %p847_p5 }
 0x198   : > { %p525_p8 = por %p524_p13, %p523_p6 }
 0x199   : > { %p521_p3 = pneg %p520_p11 }
 0x19a   : > { %p527_p7 = por %p526_p0, %p525_p8 }
 0x19c   : > { %p528_p4 = pnand %p527_p7, %p521_p3 }
 0x19e   : > { %531 = shalt.err (!%p528_p4)
}
 0x19f   : > { %379 = dma.vmem_to_hbm [thread:$0]  (%p847_p5), %s784_s30, 128, %s782_s27, %s242_s28  }
 0x1a0 PF: > { %s268_s29 = sand.u32 1, %s570_s9   ;;  %p848_p10 = scmp.ne.s32.totalorder %s840_s24, 0 }
 0x1a1   : > { %p849_p12 = scmp.ge.s32.totalorder %s590_s14, 2  ;;  %s269_s16 = scalar_lea.sflag [#allocation4], %s268_s29 }
 0x1a3   : > { %p389_p1 = pnand %p849_p12, %p848_p10 }
 0x1a5   : > { %565 = dma.done.wait (!%p389_p1), %s269_s16, 128  }
 0x1a6   : > { %567 = vsyncadd (!%p389_p1), %s269_s16, 4294967168  ;;  %s21_s14 = sadd.s32 1, %s590_s14   ;;  %s850_s9 = smov %s574_s10 }
 0x1a7   : > { %p18_p2 = scmp.ge.s32.totalorder %s21_s14, 4   ;;  %s851_s10 = smov %s578_s11 }
 0x1a8   : > { %s852_s11 = smov %s666_s23  ;;  %s853_s12 = smov %s586_s13 }
 0x1a9   : > { %s854_s13 = smov %s856_s17  ;;  %20 = sbr.rel (!%p18_p2) target bundleno = 8 (0x8), region = 86 }
 0x1b0   :  { %274 = vsyncpa [#allocation3], 1 }
 0x1b1   :  { %276 = vsyncpa [#allocation3 + $0x1], 1 }
 0x1b2   :  { %277 = vsyncpa [#allocation6], 1 }
 0x1b3   :  { %279 = vsyncpa [#allocation6 + $0x1], 1 }
 0x1b4   :  { %280 = vsyncpa [#allocation4], 1 }
 0x1b5   :  { %282 = vsyncpa [#allocation4 + $0x1], 1 }

</bundles_post_ra>
